<compile_context>
chip_gen: v7x
topology: tpu7x:2x2x1
jax: 0.10.0
libtpu: 0.0.40
codegen_flags: <defaults>
</compile_context>

<pallas_src>
import functools
import math

import jax
import jax.numpy as jnp
from jax.experimental import pallas as pl
from jax.experimental.pallas import tpu as pltpu

_MASK_VAL = -9e15                                   # matches torch "zero_vec"
_PAD_VAL = float(jnp.finfo(jnp.float32).min)        # padded columns: strictly below mask


def _round_up(x, m):
    return ((x + m - 1) // m) * m


# ---------------------------------------------------------------------------
# Kernel A: node-feature projection for one row block of nodes
#   h   = x @ W                    (bm, Fp)
#   f1  = h @ a1                   (bm, 1)    "self" attention term
#   f2t = a2 @ h^T                 (1, bm)    "neighbor" term, lane-dense row
# ---------------------------------------------------------------------------
def _gat_project_kernel(x_ref, w_ref, a1_ref, a2_ref, h_ref, f1_ref, f2t_ref):
    x = x_ref[...]                                         # (bm, F_in), native dtype
    w = w_ref[...]                                         # (F_in, Fp), native dtype
    h = jnp.dot(x, w, preferred_element_type=jnp.float32)  # MXU, f32 accumulate
    h_ref[...] = h.astype(h_ref.dtype)

    a1 = a1_ref[...]                                       # (1, Fp) f32
    a2 = a2_ref[...]                                       # (1, Fp) f32
    # Both projections on the MXU (contract the feature axis of both operands).
    f1_ref[...] = jax.lax.dot_general(                     # (bm, 1)
        h, a1, (((1,), (1,)), ((), ())), preferred_element_type=jnp.float32)
    f2t_ref[...] = jax.lax.dot_general(                    # (1, bm), lane-dense
        a2, h, (((1,), (1,)), ((), ())), preferred_element_type=jnp.float32)


# ---------------------------------------------------------------------------
# Kernel B: online-softmax masked attention + aggregation
#   grid = (row blocks "parallel", column blocks "arbitrary")
# ---------------------------------------------------------------------------
def _gat_attention_kernel(f1_ref, f2t_ref, bias_ref, adj_ref, h_ref, out_ref,
                          m_sc, l_sc, acc_sc, *, alpha, concat):
    j = pl.program_id(1)

    @pl.when(j == 0)
    def _():
        m_sc[...] = jnp.full_like(m_sc, -jnp.inf)
        l_sc[...] = jnp.zeros_like(l_sc)
        acc_sc[...] = jnp.zeros_like(acc_sc)

    f1 = f1_ref[...]                                       # (bm, 1)  f32
    f2t = f2t_ref[...]                                     # (1, bk)  f32
    e = f1 + f2t                                           # (bm, bk)
    e = jnp.where(e > 0.0, e, jnp.float32(alpha) * e)      # LeakyReLU

    # bias_ref: -9e15 for real-but-unconnected columns (matches torch), and
    # float32-min for padded columns so padding never perturbs the softmax.
    masked = jnp.where(adj_ref[...] != 0, e, bias_ref[...])

    # online softmax (flash-attention style), unnormalized accumulation
    m_prev = m_sc[...]
    m_new = jnp.maximum(m_prev, jnp.max(masked, axis=1, keepdims=True))
    scale = jnp.exp(m_prev - m_new)
    p = jnp.exp(masked - m_new)                            # (bm, bk), unnormalized
    l_sc[...] = scale * l_sc[...] + jnp.sum(p, axis=1, keepdims=True)

    h = h_ref[...]                                         # (bk, Fp)
    acc_sc[...] = scale * acc_sc[...] + jnp.dot(           # MXU, f32 accumulate
        p.astype(h.dtype), h, preferred_element_type=jnp.float32)
    m_sc[...] = m_new

    # TODO(synk): training-mode dropout on the attention weights
    # (pltpu.prng_seed / prng_random_bits); F.dropout(training=False) is identity.

    @pl.when(j == pl.num_programs(1) - 1)
    def _():
        # Deferred normalization: bm x Fp divides instead of bm x N.
        hp = acc_sc[...] / l_sc[...]
        if concat:
            hp = jnp.where(hp > 0.0, hp, jnp.expm1(jnp.minimum(hp, 0.0)))  # ELU
        out_ref[...] = hp.astype(out_ref.dtype)


# ---------------------------------------------------------------------------
# Wrapper
# ---------------------------------------------------------------------------
def gat_forward(x, adj, W, a, *, alpha=0.2, concat=True,
                block_rows=128, block_cols=512, interpret=False):
    """GraphAttentionLayer.forward (eval mode).

    x:   (N, F_in)       node features
    adj: (N, N)          adjacency (>0 means edge)
    W:   (F_in, F_out)   projection weight
    a:   (2*F_out, 1)    attention vector [a1; a2]
    """
    N, f_in = x.shape
    f_out = W.shape[1]
    assert adj.shape == (N, N)
    assert a.shape == (2 * f_out, 1)
    out_dtype = x.dtype
    f32 = jnp.float32

    # ---- static tiling / padding (all multiples of 128 -> lane-dense) -------
    n_min = _round_up(N, 128)
    bm = min(_round_up(max(block_rows, 1), 128), n_min)
    bk = min(_round_up(max(block_cols, 1), 128), n_min)
    n_pad = _round_up(N, math.lcm(bm, bk))
    f_out_p = _round_up(f_out, 128)
    # h intermediate kept in the input precision (bf16 in -> bf16 MXU operands,
    # halved HBM traffic; f32 in -> bitwise-tight vs. the reference).
    h_dtype = jnp.promote_types(x.dtype, W.dtype)

    # ---- padded operands (zeros are masked / sliced off) --------------------
    xp = jnp.pad(x, ((0, n_pad - N), (0, 0)))
    wp = jnp.pad(W.astype(x.dtype), ((0, 0), (0, f_out_p - f_out)))
    a1 = jnp.pad(a[:f_out, 0].astype(f32), (0, f_out_p - f_out)).reshape(1, f_out_p)
    a2 = jnp.pad(a[f_out:, 0].astype(f32), (0, f_out_p - f_out)).reshape(1, f_out_p)
    # int8 adjacency mask: the only O(N^2) HBM stream -> 4x less DMA than f32.
    adj_mask = jnp.pad((adj > 0).astype(jnp.int8),
                       ((0, n_pad - N), (0, n_pad - N)))
    # Per-column "masked" value: real columns get torch's -9e15, padded columns
    # get float32-min (so even all-isolated rows match the reference exactly).
    col_bias = jnp.where(jnp.arange(n_pad) < N,
                         jnp.float32(_MASK_VAL),
                         jnp.float32(_PAD_VAL)).reshape(1, n_pad)

    # --- Kernel A: h = x @ W, f1 = h@a1, f2^T = a2@h^T ------------------------
    grid_a = (n_pad // bm,)
    h, f1, f2t = pl.pallas_call(
        _gat_project_kernel,
        out_shape=(
            jax.ShapeDtypeStruct((n_pad, f_out_p), h_dtype),
            jax.ShapeDtypeStruct((n_pad, 1), f32),
            jax.ShapeDtypeStruct((1, n_pad), f32),
        ),
        grid=grid_a,
        in_specs=[
            pl.BlockSpec((bm, f_in), lambda i: (i, 0)),
            pl.BlockSpec((f_in, f_out_p), lambda i: (0, 0)),
            pl.BlockSpec((1, f_out_p), lambda i: (0, 0)),
            pl.BlockSpec((1, f_out_p), lambda i: (0, 0)),
        ],
        out_specs=(
            pl.BlockSpec((bm, f_out_p), lambda i: (i, 0)),
            pl.BlockSpec((bm, 1), lambda i: (i, 0)),
            pl.BlockSpec((1, bm), lambda i: (0, i)),
        ),
        compiler_params=pltpu.CompilerParams(
            dimension_semantics=("parallel",)),
        interpret=interpret,
    )(xp, wp, a1, a2)

    # --- Kernel B: column-tiled online-softmax attention + aggregation -------
    grid_b = (n_pad // bm, n_pad // bk)

    h_bytes = jnp.dtype(h_dtype).itemsize
    out_bytes = jnp.dtype(out_dtype).itemsize
    vmem_need = (2 * bm * bk * 1                 # adj int8 stream (double-buffered)
                 + 2 * bk * f_out_p * h_bytes    # h column tiles
                 + 2 * bm * f_out_p * out_bytes  # output block
                 + 2 * (bm + 2 * bk) * 4         # f1 / f2t / col_bias
                 + bm * (f_out_p + 2) * 4        # scratch (m, l, acc)
                 + 4 * bm * bk * 4)              # in-kernel f32 temporaries
    vmem_limit = int(min(max(2 * vmem_need, 32 << 20), 48 << 20))

    kernel_b = functools.partial(_gat_attention_kernel,
                                 alpha=float(alpha), concat=bool(concat))
    out = pl.pallas_call(
        kernel_b,
        out_shape=jax.ShapeDtypeStruct((n_pad, f_out_p), out_dtype),
        grid=grid_b,
        in_specs=[
            pl.BlockSpec((bm, 1), lambda i, j: (i, 0)),
            pl.BlockSpec((1, bk), lambda i, j: (0, j)),
            pl.BlockSpec((1, bk), lambda i, j: (0, j)),
            # TODO(synk): pipeline_mode=pl.Buffered(3) on adj if the DMA is exposed.
            pl.BlockSpec((bm, bk), lambda i, j: (i, j)),
            pl.BlockSpec((bk, f_out_p), lambda i, j: (j, 0)),
        ],
        out_specs=pl.BlockSpec((bm, f_out_p), lambda i, j: (i, 0)),
        scratch_shapes=[
            pltpu.VMEM((bm, 1), f32),          # running max
            pltpu.VMEM((bm, 1), f32),          # running denominator
            pltpu.VMEM((bm, f_out_p), f32),    # unnormalized accumulator
        ],
        compiler_params=pltpu.CompilerParams(
            dimension_semantics=("parallel", "arbitrary"),
            vmem_limit_bytes=vmem_limit),
        interpret=interpret,
    )(f1, f2t, col_bias, adj_mask, h)

    # TODO(synk): block-level sparsity skipping of all-zero (bm, bk) adjacency
    # tiles via PrefetchScalarGridSpec scalar prefetch for very sparse graphs.
    return out[:N, :f_out]


# ---------------------------------------------------------------------------
# Pure-JAX reference mirroring the PyTorch forward (eval mode)
# ---------------------------------------------------------------------------
def _gat_ref(x, adj, W, a, *, alpha=0.2, concat=True):
    hi = jax.lax.Precision.HIGHEST
    h = jnp.dot(x.astype(jnp.float32), W.astype(jnp.float32), precision=hi)
    f_out = W.shape[1]
    f1 = jnp.dot(h, a[:f_out].astype(jnp.float32), precision=hi)   # (N, 1)
    f2 = jnp.dot(h, a[f_out:].astype(jnp.float32), precision=hi)   # (N, 1)
    e = f1 + f2.T
    e = jnp.where(e > 0, e, alpha * e)                              # LeakyReLU
    att = jnp.where(adj > 0, e, _MASK_VAL)
    att = jax.nn.softmax(att, axis=1)
    hp = jnp.dot(att, h, precision=hi)
    if concat:
        hp = jnp.where(hp > 0, hp, jnp.expm1(jnp.minimum(hp, 0.0)))  # ELU
    return hp.astype(x.dtype)


if __name__ == "__main__":
    key = jax.random.PRNGKey(0)
    k1, k2, k3, k4 = jax.random.split(key, 4)

    # N not a multiple of 8 -> exercises the padding path; f_out << 128 ->
    # exercises the feature padding; block_cols=128 -> grid (2, 2), exercising
    # both the megacore row sharding and the online-softmax column reduction.
    N, F_IN, F_OUT = 200, 48, 16
    ALPHA, CONCAT = 0.2, True

    x = jax.random.normal(k1, (N, F_IN), dtype=jnp.float32)

    # Xavier-uniform params with gain 1.414, matching the PyTorch init scale.
    wb = 1.414 * math.sqrt(6.0 / (F_IN + F_OUT))
    W = jax.random.uniform(k2, (F_IN, F_OUT), jnp.float32, -wb, wb)
    ab = 1.414 * math.sqrt(6.0 / (2 * F_OUT + 1))
    a = jax.random.uniform(k3, (2 * F_OUT, 1), jnp.float32, -ab, ab)

    # random sparse adjacency with self-loops
    adj = (jax.random.uniform(k4, (N, N)) < 0.2).astype(jnp.float32)
    adj = jnp.maximum(adj, jnp.eye(N, dtype=jnp.float32))

    y = gat_forward(x, adj, W, a, alpha=ALPHA, concat=CONCAT,
                    block_rows=128, block_cols=128)
    y = jax.block_until_ready(y)

    y_ref = _gat_ref(x, adj, W, a, alpha=ALPHA, concat=CONCAT)
    assert y.shape == (N, F_OUT) and y.dtype == x.dtype
    err = float(jnp.max(jnp.abs(y - y_ref)))
    assert jnp.allclose(y, y_ref, atol=3e-4, rtol=3e-4), f"max abs err {err}"

    print("KERNEL_OK")
</pallas_src>

<mosaic_0001>
module attributes {stable_mosaic.version = 11 : i64} {
  func.func @_gat_project_kernel(%arg0: i32, %arg1: memref<128x48xf32, #tpu.memory_space<vmem>>, %arg2: memref<48x128xf32, #tpu.memory_space<vmem>>, %arg3: memref<1x128xf32, #tpu.memory_space<vmem>>, %arg4: memref<1x128xf32, #tpu.memory_space<vmem>>, %arg5: memref<128x128xf32, #tpu.memory_space<vmem>>, %arg6: memref<128x1xf32, #tpu.memory_space<vmem>>, %arg7: memref<1x128xf32, #tpu.memory_space<vmem>>) attributes {dimension_semantics = [#tpu.dimension_semantics<parallel>], iteration_bounds = array<i64: 2>, scalar_prefetch = 0 : i64, scratch_operands = 0 : i64, tpu.core_type = #tpu.core_type<tc>, window_params = [{transform_indices = @transform_0, window_bounds = array<i64: 128, 48>}, {pipeline_mode = #tpu.pipeline_mode<synchronous>, transform_indices = @transform_1, window_bounds = array<i64: 48, 128>}, {pipeline_mode = #tpu.pipeline_mode<synchronous>, transform_indices = @transform_2, window_bounds = array<i64: 1, 128>}, {pipeline_mode = #tpu.pipeline_mode<synchronous>, transform_indices = @transform_3, window_bounds = array<i64: 1, 128>}, {transform_indices = @transform_4, window_bounds = array<i64: 128, 128>}, {transform_indices = @transform_5, window_bounds = array<i64: 128, 1>}, {transform_indices = @transform_6, window_bounds = array<i64: 1, 128>}]} {
    %c0 = arith.constant 0 : index
    %c0_0 = arith.constant 0 : index
    %0 = vector.load %arg1[%c0, %c0_0] : memref<128x48xf32, #tpu.memory_space<vmem>>, vector<128x48xf32>
    %c0_1 = arith.constant 0 : index
    %c0_2 = arith.constant 0 : index
    %1 = vector.load %arg2[%c0_1, %c0_2] : memref<48x128xf32, #tpu.memory_space<vmem>>, vector<48x128xf32>
    %cst = arith.constant dense<0.000000e+00> : vector<128x128xf32>
    %2 = tpu.matmul %0, %1, %cst {dimension_numbers = #tpu.dot_dimension_numbers<[1], [0], [0], [1], [0, 0, 1, 1], [], []>} : vector<128x48xf32>, vector<48x128xf32>, vector<128x128xf32> -> vector<128x128xf32>
    %c0_3 = arith.constant 0 : index
    %c0_4 = arith.constant 0 : index
    %3 = vector.load %arg5[%c0_3, %c0_4] : memref<128x128xf32, #tpu.memory_space<vmem>>, vector<128x128xf32>
    tpu.vector_store %arg5[%c0_3, %c0_4], %2 {strides = array<i32>} : memref<128x128xf32, #tpu.memory_space<vmem>>, vector<128x128xf32>,
    %c0_5 = arith.constant 0 : index
    %c0_6 = arith.constant 0 : index
    %4 = vector.load %arg3[%c0_5, %c0_6] : memref<1x128xf32, #tpu.memory_space<vmem>>, vector<1x128xf32>
    %c0_7 = arith.constant 0 : index
    %c0_8 = arith.constant 0 : index
    %5 = vector.load %arg4[%c0_7, %c0_8] : memref<1x128xf32, #tpu.memory_space<vmem>>, vector<1x128xf32>
    %cst_9 = arith.constant dense<0.000000e+00> : vector<128x1xf32>
    %6 = tpu.matmul %2, %4, %cst_9 {dimension_numbers = #tpu.dot_dimension_numbers<[1], [1], [0], [0], [0, 0, 1, 0], [], []>} : vector<128x128xf32>, vector<1x128xf32>, vector<128x1xf32> -> vector<128x1xf32>
    %c0_10 = arith.constant 0 : index
    %c0_11 = arith.constant 0 : index
    %7 = vector.load %arg6[%c0_10, %c0_11] : memref<128x1xf32, #tpu.memory_space<vmem>>, vector<128x1xf32>
    tpu.vector_store %arg6[%c0_10, %c0_11], %6 {strides = array<i32>} : memref<128x1xf32, #tpu.memory_space<vmem>>, vector<128x1xf32>,
    %cst_12 = arith.constant dense<0.000000e+00> : vector<1x128xf32>
    %8 = tpu.matmul %5, %2, %cst_12 {dimension_numbers = #tpu.dot_dimension_numbers<[1], [1], [0], [0], [0, 0, 1, 0], [], []>} : vector<1x128xf32>, vector<128x128xf32>, vector<1x128xf32> -> vector<1x128xf32>
    %c0_13 = arith.constant 0 : index
    %c0_14 = arith.constant 0 : index
    %9 = vector.load %arg7[%c0_13, %c0_14] : memref<1x128xf32, #tpu.memory_space<vmem>>, vector<1x128xf32>
    tpu.vector_store %arg7[%c0_13, %c0_14], %8 {strides = array<i32>} : memref<1x128xf32, #tpu.memory_space<vmem>>, vector<1x128xf32>,
    return
  }
  func.func @transform_0(%arg0: i32) -> (i32, i32) {
    %c0_i32 = arith.constant 0 : i32
    %c0_i32_0 = arith.constant 0 : i32
    return %arg0, %c0_i32 : i32, i32
  }
  func.func @transform_1(%arg0: i32) -> (i32, i32) {
    %c0_i32 = arith.constant 0 : i32
    %c0_i32_0 = arith.constant 0 : i32
    %c0_i32_1 = arith.constant 0 : i32
    return %c0_i32, %c0_i32_0 : i32, i32
  }
  func.func @transform_2(%arg0: i32) -> (i32, i32) {
    %c0_i32 = arith.constant 0 : i32
    %c0_i32_0 = arith.constant 0 : i32
    %c0_i32_1 = arith.constant 0 : i32
    return %c0_i32, %c0_i32_0 : i32, i32
  }
  func.func @transform_3(%arg0: i32) -> (i32, i32) {
    %c0_i32 = arith.constant 0 : i32
    %c0_i32_0 = arith.constant 0 : i32
    %c0_i32_1 = arith.constant 0 : i32
    return %c0_i32, %c0_i32_0 : i32, i32
  }
  func.func @transform_4(%arg0: i32) -> (i32, i32) {
    %c0_i32 = arith.constant 0 : i32
    %c0_i32_0 = arith.constant 0 : i32
    return %arg0, %c0_i32 : i32, i32
  }
  func.func @transform_5(%arg0: i32) -> (i32, i32) {
    %c0_i32 = arith.constant 0 : i32
    %c0_i32_0 = arith.constant 0 : i32
    return %arg0, %c0_i32 : i32, i32
  }
  func.func @transform_6(%arg0: i32) -> (i32, i32) {
    %c0_i32 = arith.constant 0 : i32
    %c0_i32_0 = arith.constant 0 : i32
    return %c0_i32, %arg0 : i32, i32
  }
}

</mosaic_0001>

<bundles_post_ra>
// kernel: tpu_custom_call.1
= control target key start
LH: loop header
LB: loop body
LE: loop exit
PB: predicated region body
PF: predicated region fallthrough
CT: control target
= control target key end

     0   :  { %12 = vsyncpa [#allocation3], 0  ;;  %s1460_s0 = inlined_call_operand.vmem [shape: f32[256,48], index: 0, kind: input, shape index: {}]   ;;  %s1461_s1 = inlined_call_operand.vmem [shape: f32[48,128], index: 1, kind: input, shape index: {}]   ;;  %s1462_s2 = inlined_call_operand.vmem [shape: f32[1,128], index: 2, kind: input, shape index: {}]   ;;  %s1463_s3 = inlined_call_operand.vmem [shape: f32[1,128], index: 3, kind: input, shape index: {}]   ;;  %s1464_s4 = inlined_call_operand.hbm [shape: f32[256,128], index: 4, kind: output, shape index: {0}]   ;;  %s1465_s5 = inlined_call_operand.vmem [shape: f32[256,1], index: 5, kind: output, shape index: {1}]   ;;  %s1466_s6 = inlined_call_operand.hbm [shape: f32[1,256], index: 6, kind: output, shape index: {2}]  }
   0x1   :  { %14 = vsyncpa [#allocation3 + $0x1], 0 }
   0x2   :  { %15 = vsyncpa [#allocation5], 0 }
   0x3   :  { %17 = vsyncpa [#allocation5 + $0x1], 0  ;;  %s1173_s21 = smov 0   ;;  %s1175_s22 = smov 0  }
   0x4   :  { %s1177_s23 = smov 0   ;;  %s1179_s24 = smov 0  }
   0x5 LB: > { %s1194_s25 = sadd.s32 4294967295, %s1129_s24   ;;  %s807_s26 = sadd.s32 4294967294, %s1129_s24   ;;  %s1129_s24 = sphi %s1179_s24, %s1472_s24   ;;  %s1125_s23 = sphi %s1177_s23, %s1471_s23   ;;  %s1121_s22 = sphi %s1175_s22, %s1470_s22   ;;  %s1117_s21 = sphi %s1173_s21, %s1469_s21  }
   0x6   : > { %s1198_s27 = sadd.s32 1, %s1129_s24   ;;  %s119_s28 = sadd.s32 1, %s1125_s23 }
   0x7   : > { %s116_s29 = ssub.s32 %s1129_s24, %s1198_s27  ;;  %p129_p0 = scmp.ne.s32.totalorder %s1125_s23, %s1121_s22 }
   0x8   : > { %p117_p1 = scmp.eq.s32.totalorder %s116_s29, 0  ;;  %p130_p2 = scmp.eq.s32.totalorder %s1194_s25, 1 }
   0x9   : > { %p135_p3 = scmp.ne.s32.totalorder %s1121_s22, %s1117_s21  ;;  %p136_p4 = scmp.eq.s32.totalorder %s807_s26, 1 }
   0xa   : > { %s1209_s30 = scalar_select %p117_p1, %s1125_s23, %s119_s28  }
   0xb   : > { %p1211_p5 = por %p130_p2, %p129_p0  ;;  %p1215_p6 = por %p136_p4, %p135_p3 }
   0xc   : > { %p810_p7 = scmp.ge.s32.totalorder %s1129_s24, 1  ;;  %p224_p8 = scmp.lt.s32.totalorder %s1129_s24, 3 }
   0xe   : > { %p225_p9 = pnand %p810_p7, %p224_p8 }
   0xf   : > { %v292_v0 = vld [vmem:[%s1461_s1] sm:$0xff] (!%p225_p9)  ;;  %v293_v1 = vld [vmem:[%s1461_s1 + $0x8] sm:$0xff] (!%p225_p9)  ;;  %v294_v2 = vld [vmem:[%s1461_s1 + $0x10] sm:$0xff] (!%p225_p9)  ;;  %s1231_s15 = sshll.u32 (!%p225_p9), %s1194_s25, 4  ;;  %vm298_vm0 = vcmask (!%p225_p9), 392192   ;;  %v1131_v25 = vmov (!%p225_p9), 0.0|0.0  }
  0x10   : > { %228 = sbr.rel (%p225_p9) target bundleno = 534 (0x216), region = 36  ;;  %v950_v3 = vpack.c.bf16 (!%p225_p9), %v293_v1, %v292_v0  ;;  %v295_v4 = vld [vmem:[%s1461_s1 + $0x18] sm:$0xff] (!%p225_p9)  ;;  %p264_p10 = scmp.lt.s32.totalorder (!%p225_p9), %s1231_s15, 31  ;;  %v296_v6 = vld [vmem:[%s1461_s1 + $0x20] sm:$0xff] (!%p225_p9)  ;;  %v297_v7 = vld [vmem:[%s1461_s1 + $0x28] sm:$0xff] (!%p225_p9)  ;;  %962 = vmatprep.subr.bf16.mxu1 (!%p225_p9), %v1131_v25  ;;  %vm1132_vm1 = vmmov (!%p225_p9), 0  }
  0x11   : > { %v954_v5 = vpack.c.bf16 (!%p225_p9), %v295_v4, %v294_v2  ;;  %v958_v8 = vpack.c.bf16 (!%p225_p9), %v297_v7, %v296_v6  ;;  %v1133_v26 = vmov (!%p225_p9), 0.0   ;;  %s1288_s12 = sand.u32 (!%p225_p9), 1, %s1121_s22   ;;  %v1294_v27 = vld [vmem:[%s1462_s2] ss:$0 sm:$0xff] (!%p225_p9)  ;;  %vm564_vm2 = vcmask (!%p225_p9), 7168  }
  0x12   : > { %951 = vmatprep.subr.bf16.mxu0 (!%p225_p9), %v950_v3  ;;  %947 = vmatprep.mubr.msk.f32.mxu1 (!%p225_p9), %vm1132_vm1, %v1133_v26  ;;  %s811_s13 = sshll.u32 (!%p225_p9), %s1288_s12, 7  ;;  %v509_v4 = vld [vmem:[%s1463_s3] sm:$0x1] (!%p225_p9)  ;;  %s653_s14 = scalar_lea.sflag (!%p225_p9), [#allocation3], %s1288_s12 }
  0x13   : > { %953 = vmatpush3.bf16.msra.mxu0 (!%p225_p9), %v950_v3  ;;  %s1296_s17 = scalar_lea.vmem (!%p225_p9), [#allocation2], %s811_s13 }
  0x14   : > { %955 = vmatprep.subr.bf16.mxu0 (!%p225_p9), %v954_v5  ;;  %s675_s13 = sshll.u32 (!%p225_p9), %s1296_s17, 4  ;;  %s1362_s13 = int_to_ptr.vmem [resolvable:$true] %s675_s13 }
  0x15   : > { %s1035_s16 = scalar_lea.vmem (!%p225_p9), %s1362_s13, 2048 }
  0x16   : > { %p1036_p11 = scmp.ne.s32.totalorder (!%p225_p9), %s1362_s13, %s1035_s16 }
  0x17   : > { %s1244_s28 = scalar_select %p264_p10, %s1231_s15, 31  ;;  %957 = vmatpush3.bf16.msra.mxu0 %v954_v5 }
  0x18   : > { %959 = vmatprep.subr.bf16.mxu0 %v958_v8  ;;  %p1037_p12 = pnand %p1036_p11, %p1211_p5 }
  0x19   : > { %s813_s29 = sshll.u32 %s1244_s28, 3  ;;  %s839_s28 = sshll.u32 %s1194_s25, 11 }
  0x1a   : > { %s1252_s11 = scalar_lea.vmem %s1460_s0, %s813_s29  ;;  %s1345_s9 = scalar_lea.vmem %s1465_s5, %s813_s29 }
  0x1b   : > { %v276_v9 = vld [vmem:[%s1252_s11] sm:$0xff]  ;;  %961 = vmatpush3.bf16.msra.mxu0 %v958_v8  ;;  %v277_v10 = vld [vmem:[%s1252_s11 + $0x8] sm:$0xff]  ;;  %v278_v11 = vld [vmem:[%s1252_s11 + $0x10] sm:$0xff]  ;;  %p1038_p13 = pneg %p1037_p12  ;;  %s1134_s25 = smov [#allocation2]  }
  0x1c   : > { %891 = vmatprep.mubr.msk.f32.mxu0 %vm298_vm0, %v276_v9  ;;  %v279_v12 = vld [vmem:[%s1252_s11 + $0x18] sm:$0xff]  ;;  %v280_v13 = vld [vmem:[%s1252_s11 + $0x20] sm:$0xff]  ;;  %v281_v14 = vld [vmem:[%s1252_s11 + $0x28] sm:$0xff]  ;;  %s1039_s18 = sshll.u32 %s1134_s25, 4  ;;  %s1040_s18 = int_to_ptr.vmem [resolvable:$false] %s1039_s18 }
  0x1d   : > { %v282_v15 = vld [vmem:[%s1252_s11 + $0x30] sm:$0xff]  ;;  %v283_v16 = vld [vmem:[%s1252_s11 + $0x38] sm:$0xff]  ;;  %v284_v17 = vld [vmem:[%s1252_s11 + $0x40] sm:$0xff]  ;;  %p1042_p0 = scmp.lt.s32.totalorder %s1362_s13, %s1040_s18 }
  0x1e   : > { %892 = vmatmul.mubr.msk.f32.vlgmr.msra.gmra.mrb[0].mxu0 %vm298_vm0, %v277_v10  ;;  %v285_v18 = vld [vmem:[%s1252_s11 + $0x48] sm:$0xff]  ;;  %v286_v19 = vld [vmem:[%s1252_s11 + $0x50] sm:$0xff]  ;;  %v287_v20 = vld [vmem:[%s1252_s11 + $0x58] sm:$0xff] }
  0x1f   : > { %894 = vmatprep.mubr.msk.f32.mxu0 %vm298_vm0, %v278_v11  ;;  %v288_v21 = vld [vmem:[%s1252_s11 + $0x60] sm:$0xff]  ;;  %v289_v22 = vld [vmem:[%s1252_s11 + $0x68] sm:$0xff]  ;;  %v290_v23 = vld [vmem:[%s1252_s11 + $0x70] sm:$0xff] }
  0x20   : > { %v291_v24 = vld [vmem:[%s1252_s11 + $0x78] sm:$0xff]  ;;  %s1357_s11 = scalar_lea.hbm %s1464_s4, %s839_s28 }
  0x22   : > { %895 = vmatmul.mubr.msk.f32.gmra.mrb[2].mxu0 %vm298_vm0, %v279_v12 }
  0x23   : > { %897 = vmatprep.mubr.msk.f32.mxu0 %vm298_vm0, %v280_v13 }
  0x26   : > { %898 = vmatmul.mubr.msk.f32.gmra.mrb[4].mxu0 %vm298_vm0, %v281_v14 }
  0x27   : > { %900 = vmatprep.mubr.msk.f32.mxu0 %vm298_vm0, %v282_v15 }
  0x2a   : > { %901 = vmatmul.mubr.msk.f32.gmra.mrb[6].mxu0 %vm298_vm0, %v283_v16 }
  0x2b   : > { %903 = vmatprep.mubr.msk.f32.mxu0 %vm298_vm0, %v284_v17 }
  0x2e   : > { %904 = vmatmul.mubr.msk.f32.gmra.mrb[8].mxu0 %vm298_vm0, %v285_v18 }
  0x2f   : > { %906 = vmatprep.mubr.msk.f32.mxu0 %vm298_vm0, %v286_v19 }
  0x32   : > { %907 = vmatmul.mubr.msk.f32.gmra.mrb[10].mxu0 %vm298_vm0, %v287_v20 }
  0x33   : > { %909 = vmatprep.mubr.msk.f32.mxu0 %vm298_vm0, %v288_v21 }
  0x36   : > { %910 = vmatmul.mubr.msk.f32.gmra.mrb[12].mxu0 %vm298_vm0, %v289_v22 }
  0x37   : > { %912 = vmatprep.mubr.msk.f32.mxu0 %vm298_vm0, %v290_v23 }
  0x3a   : > { %913 = vmatmul.mubr.msk.f32.gmra.mrb[14].mxu0 %vm298_vm0, %v291_v24 }
  0xf1   : > { %v893_v28 = vpop.f32.mrb[0].mxu0 }
  0xf2   : > { %493 = vst [vmem:[%s1296_s17 + $0x8] sm:$0xff] %v893_v28  ;;  %v413_v29 = vpop.f32.mrb[1].mxu0  ;;  %v517_v30 = vmul.f32 %v893_v28, %v1294_v27 }
  0xf3   : > { %492 = vst [vmem:[%s1296_s17] sm:$0xff] %v413_v29  ;;  %v963_v31 = vpack.c.bf16 %v893_v28, %v413_v29  ;;  %v516_v33 = vmul.f32 %v1294_v27, %v413_v29 }
  0xf4   : > { %534 = vadd.xlane.f32.xlu0 %v517_v30 }
  0xf5   : > { %v896_v32 = vpop.f32.mrb[2].mxu0  ;;  %964 = vmatpush3.bf16.xpose.msra.mxu1 %v963_v31 }
  0xf6   : > { %495 = vst [vmem:[%s1296_s17 + $0x18] sm:$0xff] %v896_v32  ;;  %v519_v34 = vmul.f32 %v896_v32, %v1294_v27  ;;  %v423_v35 = vpop.f32.mrb[3].mxu0  ;;  %965 = vmatprep.subr.bf16.mxu1 %v1131_v25 }
  0xf7   : > { %494 = vst [vmem:[%s1296_s17 + $0x10] sm:$0xff] %v423_v35  ;;  %v966_v36 = vpack.c.bf16 %v896_v32, %v423_v35  ;;  %v518_v37 = vmul.f32 %v1294_v27, %v423_v35 }
  0xf8   : > { %532 = vadd.xlane.f32.xlu0 %v516_v33  ;;  %538 = vadd.xlane.f32.xlu1 %v519_v34 }
  0xf9   : > { %v899_v38 = vpop.f32.mrb[4].mxu0 }
  0xfa   : > { %497 = vst [vmem:[%s1296_s17 + $0x28] sm:$0xff] %v899_v38  ;;  %v433_v39 = vpop.f32.mrb[5].mxu0  ;;  %v521_v42 = vmul.f32 %v899_v38, %v1294_v27 }
  0xfb   : > { %496 = vst [vmem:[%s1296_s17 + $0x20] sm:$0xff] %v433_v39  ;;  %v969_v40 = vpack.c.bf16 %v899_v38, %v433_v39  ;;  %v520_v41 = vmul.f32 %v1294_v27, %v433_v39 }
  0xfc   : > { %536 = vadd.xlane.f32.xlu1 %v518_v37 }
  0xfd   : > { %967 = vmatpush3.bf16.xpose.msra.mxu1 %v966_v36  ;;  %540 = vadd.xlane.f32.xlu0 %v520_v41  ;;  %v902_v43 = vpop.f32.mrb[6].mxu0 }
  0xfe   : > { %968 = vmatprep.subr.bf16.mxu1 %v1131_v25  ;;  %499 = vst [vmem:[%s1296_s17 + $0x38] sm:$0xff] %v902_v43  ;;  %v443_v44 = vpop.f32.mrb[7].mxu0  ;;  %v523_v47 = vmul.f32 %v902_v43, %v1294_v27 }
  0xff   : > { %498 = vst [vmem:[%s1296_s17 + $0x30] sm:$0xff] %v443_v44  ;;  %v972_v45 = vpack.c.bf16 %v902_v43, %v443_v44  ;;  %v522_v46 = vmul.f32 %v1294_v27, %v443_v44 }
 0x100   : > { %542 = vadd.xlane.f32.xlu1 %v521_v42 }
 0x101   : > { %544 = vadd.xlane.f32.xlu0 %v522_v46  ;;  %v905_v48 = vpop.f32.mrb[8].mxu0 }
 0x102   : > { %501 = vst [vmem:[%s1296_s17 + $0x48] sm:$0xff] %v905_v48  ;;  %v453_v49 = vpop.f32.mrb[9].mxu0  ;;  %v525_v52 = vmul.f32 %v905_v48, %v1294_v27 }
 0x103   : > { %500 = vst [vmem:[%s1296_s17 + $0x40] sm:$0xff] %v453_v49  ;;  %v975_v50 = vpack.c.bf16 %v905_v48, %v453_v49  ;;  %v524_v51 = vmul.f32 %v1294_v27, %v453_v49 }
 0x104   : > { %546 = vadd.xlane.f32.xlu1 %v523_v47 }
 0x105   : > { %970 = vmatpush3.bf16.xpose.msra.mxu1 %v969_v40  ;;  %548 = vadd.xlane.f32.xlu0 %v524_v51  ;;  %v908_v53 = vpop.f32.mrb[10].mxu0 }
 0x106   : > { %971 = vmatprep.subr.bf16.mxu1 %v1131_v25  ;;  %503 = vst [vmem:[%s1296_s17 + $0x58] sm:$0xff] %v908_v53  ;;  %v463_v54 = vpop.f32.mrb[11].mxu0  ;;  %v527_v57 = vmul.f32 %v908_v53, %v1294_v27 }
 0x107   : > { %502 = vst [vmem:[%s1296_s17 + $0x50] sm:$0xff] %v463_v54  ;;  %v978_v55 = vpack.c.bf16 %v908_v53, %v463_v54  ;;  %v526_v56 = vmul.f32 %v1294_v27, %v463_v54 }
 0x108   : > { %550 = vadd.xlane.f32.xlu1 %v525_v52 }
 0x109   : > { %552 = vadd.xlane.f32.xlu0 %v526_v56  ;;  %v911_v58 = vpop.f32.mrb[12].mxu0 }
 0x10a   : > { %505 = vst [vmem:[%s1296_s17 + $0x68] sm:$0xff] %v911_v58  ;;  %v473_v59 = vpop.f32.mrb[13].mxu0  ;;  %v529_v62 = vmul.f32 %v911_v58, %v1294_v27 }
 0x10b   : > { %504 = vst [vmem:[%s1296_s17 + $0x60] sm:$0xff] %v473_v59  ;;  %v981_v60 = vpack.c.bf16 %v911_v58, %v473_v59  ;;  %v528_v61 = vmul.f32 %v1294_v27, %v473_v59 }
 0x10c   : > { %554 = vadd.xlane.f32.xlu1 %v527_v57 }
 0x10d   : > { %973 = vmatpush3.bf16.xpose.msra.mxu1 %v972_v45  ;;  %556 = vadd.xlane.f32.xlu0 %v528_v61  ;;  %v914_v63 = vpop.f32.mrb[14].mxu0 }
 0x10e   : > { %974 = vmatprep.subr.bf16.mxu1 %v1131_v25  ;;  %507 = vst [vmem:[%s1296_s17 + $0x78] sm:$0xff] %v914_v63  ;;  %v483_v0 = vpop.f32.mrb[15].mxu0  ;;  %v531_v3 = vmul.f32 %v914_v63, %v1294_v27 }
 0x10f   : > { %506 = vst [vmem:[%s1296_s17 + $0x70] sm:$0xff] %v483_v0  ;;  %v984_v1 = vpack.c.bf16 %v914_v63, %v483_v0  ;;  %v530_v2 = vmul.f32 %v1294_v27, %v483_v0  ;;  %s1041_s17 = scalar_lea.vmem %s1040_s18, 4096 }
 0x110   : > { %558 = vadd.xlane.f32.xlu1 %v529_v62  ;;  %p1043_p1 = scmp.lt.s32.totalorder %s1041_s17, %s1035_s16 }
 0x111   : > { %560 = vadd.xlane.f32.xlu0 %v530_v2 }
 0x112   : > { %p1044_p2 = por %p1043_p1, %p1042_p0 }
 0x114   : > { %562 = vadd.xlane.f32.xlu1 %v531_v3  ;;  %p1045_p3 = pnand %p1044_p2, %p1038_p13 }
 0x115   : > { %976 = vmatpush3.bf16.xpose.msra.mxu1 %v975_v50 }
 0x116   : > { %977 = vmatprep.subr.bf16.mxu1 %v1131_v25 }
 0x11d   : > { %979 = vmatpush3.bf16.xpose.msra.mxu1 %v978_v55 }
 0x11e   : > { %980 = vmatprep.subr.bf16.mxu1 %v1131_v25 }
 0x125   : > { %982 = vmatpush3.bf16.xpose.msra.mxu1 %v981_v60 }
 0x126   : > { %983 = vmatprep.subr.bf16.mxu1 %v1131_v25 }
 0x12d   : > { %985 = vmatpush3.bf16.xpose.msra.mxu1 %v984_v1 }
 0x134   : > { %948 = vmatmul.mubr.f32.vlgmr.msra.gmra.mrb[0].mxu1 %v509_v4 }
 0x181   : > { %v535_v5 = vpop.xlane.xlu0 %534 }
 0x182   : > { %566 = vst.msk [vmem:[%s1345_s9 + $0x8] sm:$0xff] %vm564_vm2, %v535_v5 }
 0x185   : > { %v533_v6 = vpop.xlane.xlu0 %532  ;;  %v539_v7 = vpop.xlane.xlu1 %538 }
 0x186   : > { %565 = vst.msk [vmem:[%s1345_s9] sm:$0xff] %vm564_vm2, %v533_v6  ;;  %568 = vst.msk [vmem:[%s1345_s9 + $0x18] sm:$0xff] %vm564_vm2, %v539_v7 }
 0x189   : > { %v537_v8 = vpop.xlane.xlu1 %536 }
 0x18a   : > { %567 = vst.msk [vmem:[%s1345_s9 + $0x10] sm:$0xff] %vm564_vm2, %v537_v8  ;;  %v541_v9 = vpop.xlane.xlu0 %540 }
 0x18b   : > { %569 = vst.msk [vmem:[%s1345_s9 + $0x20] sm:$0xff] %vm564_vm2, %v541_v9 }
 0x18c   : > { %1048 = shalt.err (!%p1045_p3)
}
 0x18d   : > { %s1049_s19 = scalar_lea.hbm %s1357_s11, 2048  ;;  %s1053_s28 = scalar_lea.hbm %s1464_s4, 4096 }
 0x18e   : > { %p1050_p4 = scmp.ne.s32.totalorder %s1357_s11, %s1049_s19  ;;  %p1054_p9 = scmp.lt.u32.totalorder %s1357_s11, %s1464_s4 }
 0x18f   : > { %p1055_p10 = scmp.lt.u32.totalorder %s1053_s28, %s1049_s19  ;;  %p1057_p12 = scmp.lt.u32.totalorder %s1049_s19, %s1357_s11 }
 0x190   : > { %p1051_p7 = pnand %p1050_p4, %p1211_p5 }
 0x191   : > { %p1056_p11 = por %p1055_p10, %p1054_p9 }
 0x192   : > { %p1052_p8 = pneg %p1051_p7 }
 0x193   : > { %p1058_p13 = por %p1057_p12, %p1056_p11 }
 0x195   : > { %p1059_p0 = pnand %p1058_p13, %p1052_p8 }
 0x197   : > { %1062 = shalt.err (!%p1059_p0)
}
 0x198   : > { %s1135_s16 = smov 128   ;;  %s1136_s25 = smov 8   ;;  %v543_v10 = vpop.xlane.xlu1 %542  ;;  %v545_v11 = vpop.xlane.xlu0 %544 }
 0x199   : > { %986 = dma.vmem_to_hbm [thread:$0]  (%p1211_p5), %s1362_s13, 2048, %s1357_s11, %s653_s14, %s1135_s16, %s1135_s16, %s1136_s25  }
 0x19a   : > { %570 = vst.msk [vmem:[%s1345_s9 + $0x28] sm:$0xff] %vm564_vm2, %v543_v10  ;;  %571 = vst.msk [vmem:[%s1345_s9 + $0x30] sm:$0xff] %vm564_vm2, %v545_v11  ;;  %s262_s11 = scalar_lea.vmem [#allocation4], %s1288_s12  ;;  %s1419_s17 = scalar_lea.hbm %s1466_s6, %s1231_s15 }
 0x19b   : > { %s695_s13 = sshll.u32 %s262_s11, 4  ;;  %s663_s19 = scalar_lea.sflag [#allocation5], %s1288_s12  ;;  %s1413_s13 = int_to_ptr.vmem [resolvable:$true] %s695_s13 }
 0x19c   : > { %v547_v12 = vpop.xlane.xlu1 %546  ;;  %v549_v13 = vpop.xlane.xlu0 %548  ;;  %s1063_s20 = scalar_lea.vmem %s1413_s13, 16 }
 0x19d   : > { %572 = vst.msk [vmem:[%s1345_s9 + $0x38] sm:$0xff] %vm564_vm2, %v547_v12  ;;  %573 = vst.msk [vmem:[%s1345_s9 + $0x40] sm:$0xff] %vm564_vm2, %v549_v13  ;;  %p1064_p1 = scmp.ne.s32.totalorder %s1413_s13, %s1063_s20 }
 0x19f   : > { %p1065_p2 = pnand %p1064_p1, %p1211_p5 }
 0x1a0   : > { %v551_v14 = vpop.xlane.xlu1 %550  ;;  %v553_v15 = vpop.xlane.xlu0 %552 }
 0x1a1   : > { %574 = vst.msk [vmem:[%s1345_s9 + $0x48] sm:$0xff] %vm564_vm2, %v551_v14  ;;  %575 = vst.msk [vmem:[%s1345_s9 + $0x50] sm:$0xff] %vm564_vm2, %v553_v15  ;;  %p1066_p3 = pneg %p1065_p2 }
 0x1a4   : > { %v555_v16 = vpop.xlane.xlu1 %554  ;;  %v557_v17 = vpop.xlane.xlu0 %556 }
 0x1a5   : > { %576 = vst.msk [vmem:[%s1345_s9 + $0x58] sm:$0xff] %vm564_vm2, %v555_v16  ;;  %577 = vst.msk [vmem:[%s1345_s9 + $0x60] sm:$0xff] %vm564_vm2, %v557_v17 }
 0x1a8   : > { %v559_v18 = vpop.xlane.xlu1 %558  ;;  %v561_v19 = vpop.xlane.xlu0 %560 }
 0x1a9   : > { %578 = vst.msk [vmem:[%s1345_s9 + $0x68] sm:$0xff] %vm564_vm2, %v559_v18  ;;  %579 = vst.msk [vmem:[%s1345_s9 + $0x70] sm:$0xff] %vm564_vm2, %v561_v19 }
 0x1ac   : > { %v563_v20 = vpop.xlane.xlu1 %562 }
 0x1ad   : > { %580 = vst.msk [vmem:[%s1345_s9 + $0x78] sm:$0xff] %vm564_vm2, %v563_v20  ;;  %s1137_s9 = smov [#allocation4]  }
 0x1ae   : > { %s1067_s26 = sshll.u32 %s1137_s9, 4  ;;  %s1068_s26 = int_to_ptr.vmem [resolvable:$false] %s1067_s26 }
 0x1af   : > { %s1069_s28 = scalar_lea.vmem %s1068_s26, 32  ;;  %p1070_p4 = scmp.lt.s32.totalorder %s1413_s13, %s1068_s26 }
 0x1b0   : > { %p1071_p7 = scmp.lt.s32.totalorder %s1069_s28, %s1063_s20 }
 0x1b2   : > { %p1072_p8 = por %p1071_p7, %p1070_p4 }
 0x1b4   : > { %p1073_p9 = pnand %p1072_p8, %p1066_p3 }
 0x207   : > { %v647_v21 = vpop.f32.mrb[0].mxu1 }
 0x208   : > { %651 = vst [vmem:[%s262_s11] sm:$0x1] %v647_v21  ;;  %v949_v22 = vpop.f32.mrb[1].mxu1 }
 0x209   : > { %1076 = shalt.err (!%p1073_p9)
}
 0x20a   : > { %s1077_s15 = scalar_lea.hbm %s1419_s17, 16  ;;  %s1081_s10 = scalar_lea.hbm %s1466_s6, 32 }
 0x20b   : > { %p1078_p10 = scmp.ne.s32.totalorder %s1419_s17, %s1077_s15  ;;  %p1082_p13 = scmp.lt.u32.totalorder %s1419_s17, %s1466_s6 }
 0x20c   : > { %p1083_p0 = scmp.lt.u32.totalorder %s1081_s10, %s1077_s15  ;;  %p1085_p2 = scmp.lt.u32.totalorder %s1077_s15, %s1419_s17 }
 0x20d   : > { %p1079_p11 = pnand %p1078_p10, %p1211_p5 }
 0x20e   : > { %p1084_p1 = por %p1083_p0, %p1082_p13 }
 0x20f   : > { %p1080_p12 = pneg %p1079_p11 }
 0x210   : > { %p1086_p3 = por %p1085_p2, %p1084_p1 }
 0x212   : > { %p1087_p4 = pnand %p1086_p3, %p1080_p12 }
 0x214   : > { %1090 = shalt.err (!%p1087_p4)
}
 0x215   : > { %987 = dma.vmem_to_hbm [thread:$0]  (%p1211_p5), %s1413_s13, 16, %s1419_s17, %s663_s19  }
 0x216 PF: > { %p997_p7 = scmp.ge.s32.totalorder %s1129_s24, 2  ;;  %s707_s11 = sand.u32 1, %s1117_s21  }
 0x217   : > { %s708_s14 = scalar_lea.sflag [#allocation3], %s707_s11 }
 0x218   : > { %p991_p8 = pnand %p997_p7, %p1215_p6 }
 0x21a   : > { %1108 = dma.done.wait (!%p991_p8), %s708_s14, 2048  }
 0x21b   : > { %1110 = vsyncadd (!%p991_p8), %s708_s14, 4294965248  ;;  %s725_s18 = scalar_lea.sflag [#allocation5], %s707_s11 }
 0x21c   : > { %1112 = dma.done.wait (!%p991_p8), %s725_s18, 16  }
 0x21d   : > { %1114 = vsyncadd (!%p991_p8), %s725_s18, 4294967280  ;;  %p20_p5 = scmp.ge.s32.totalorder %s1198_s27, 4   ;;  %s1469_s21 = smov %s1121_s22 }
 0x21e   : > { %s1470_s22 = smov %s1125_s23  ;;  %s1471_s23 = smov %s1209_s30 }
 0x21f   : > { %s1472_s24 = smov %s1198_s27  ;;  %22 = sbr.rel (!%p20_p5) target bundleno = 5 (0x5), region = 100 }
 0x226   :  { %729 = vsyncpa [#allocation3], 1 }
 0x227   :  { %731 = vsyncpa [#allocation3 + $0x1], 1 }
 0x228   :  { %732 = vsyncpa [#allocation5], 1 }
 0x229   :  { %734 = vsyncpa [#allocation5 + $0x1], 1 }

</bundles_post_ra>
